<compile_context>
chip_gen: v7x
topology: tpu7x:2x2x1
jax: 0.10.0
libtpu: 0.0.40
codegen_flags: <defaults>
</compile_context>

<pallas_src>
import functools

import jax
import jax.numpy as jnp
from jax.experimental import pallas as pl
from jax.experimental.pallas import tpu as pltpu

LANE = 128
SUBLANE = 8
MAX_TILE_ROWS = 8192           # 8192 * 128 * 4 B = 4 MiB of f32 per input block
MIN_INNER_STEPS = 4            # keep the DMA/compute pipeline busy for mid-size inputs
SHARD_MIN_BYTES = 512 * 1024   # use 2 partial-sum shards once each has >= 512 KiB of work
VMEM_LIMIT_BYTES = 40 * 1024 * 1024


def _round_up(x, m):
    return -(-x // m) * m


def _cdiv(a, b):
    return -(-a // b)


def _slab_dtype(x):
    # Keep f32/bf16 in native dtype (cast happens in-kernel, hidden under DMA);
    # anything else (f64/f16/int) takes one wrapper cast to f32.
    if x.dtype == jnp.float32 or x.dtype == jnp.bfloat16:
        return x
    return x.astype(jnp.float32)


def _sublane_pack(dtype):
    # Sublane packing requirement of the block's second-minor dim: f32 -> 8, bf16 -> 16.
    return SUBLANE * (4 // jnp.dtype(dtype).itemsize)


def _plan(rows, pack):
    """Pick (n_shards, inner, tile_rows) for a (rows, 128) slab."""
    max_tile_rows = _round_up(MAX_TILE_ROWS, pack)
    row_bytes = LANE * 4
    # Two partial-sum shards (leading "parallel" axis) once there is enough work
    # for both v7x TensorCores; on v5e/v6e it is just a harmless serial loop.
    n_shards = 2 if rows * row_bytes >= 2 * SHARD_MIN_BYTES else 1
    rows_per_shard = _cdiv(rows, n_shards)
    # At least MIN_INNER_STEPS inner steps so the input DMA overlaps the VPU work.
    tile_rows = min(max_tile_rows,
                    _round_up(_cdiv(rows_per_shard, MIN_INNER_STEPS), pack))
    if n_shards == 1 and tile_rows >= rows:
        tile_rows = rows                       # single full-dim block: always legal
    inner = _cdiv(rows_per_shard, tile_rows)
    return n_shards, inner, tile_rows


def _acc_metric_kernel(pred_ref, true_ref, sum_ref, cnt_ref, *,
                       cap, rows, tile_rows, needs_mask):
    """Accumulate masked squared relative error / valid count for one block."""
    j = pl.program_id(1)

    @pl.when(j == 0)
    def _init():
        sum_ref[...] = jnp.zeros_like(sum_ref)
        cnt_ref[...] = jnp.zeros_like(cnt_ref)

    t = true_ref[...].astype(jnp.float32)
    p = pred_ref[...].astype(jnp.float32)

    valid = jnp.logical_not(jnp.isnan(t))
    if needs_mask:
        # Slab rows are not an exact multiple of the grid coverage: mask rows of
        # the partial / clamped trailing block(s) by global row index.
        block = pl.program_id(0) * pl.num_programs(1) + j
        row_ids = block * tile_rows + jax.lax.broadcasted_iota(jnp.int32, t.shape, 0)
        valid = jnp.logical_and(valid, row_ids < rows)

    thresh = jnp.float32(0.2 * cap)
    # S_i = max(true, 0.2*cap) >= 0.2*cap > 0, so the divide is always safe for
    # non-NaN lanes; NaN / out-of-bounds lanes are zeroed by the mask below.
    s_i = jnp.maximum(t, thresh)
    diff = (t - p) / s_i     # exact divide (approx reciprocal shifts metric ~1e-3)
    sq = jnp.where(valid, diff * diff, jnp.float32(0.0))
    cnt = valid.astype(jnp.float32)

    # Per-block reduction into one (8, 128) vreg per quantity.  The reshape
    # (tile_rows,128)->(tile_rows//8,8,128) only regroups whole sublane tiles
    # (layout no-op) and the axis-0 sum is pure VPU vreg adds -- no XLU, no
    # full-tile scratch traffic.  The output ref itself is the accumulator.
    if tile_rows % SUBLANE == 0:
        sum_ref[...] += jnp.sum(sq.reshape(-1, SUBLANE, LANE), axis=0)
        cnt_ref[...] += jnp.sum(cnt.reshape(-1, SUBLANE, LANE), axis=0)
    else:
        # Tiny full-array block (< 8 rows): one small cross-sublane reduce.
        sum_ref[0:1, :] += jnp.sum(sq, axis=0, keepdims=True)
        cnt_ref[0:1, :] += jnp.sum(cnt, axis=0, keepdims=True)


def accuracy_metric_loss(pred, true, cap=200.0):
    """Pallas-backed equivalent of AccuracyMetricLoss.forward (returns f32 scalar)."""
    pred = jnp.asarray(pred)
    true = jnp.asarray(true)
    assert pred.shape == true.shape, (
        "Shape mismatch between prediction and ground truth arrays")

    pred = _slab_dtype(pred)
    true = _slab_dtype(true)

    n = int(pred.size)
    thresh = jnp.float32(0.2 * cap)

    pred_flat = jnp.ravel(pred)
    true_flat = jnp.ravel(true)

    rows = n // LANE
    n_main = rows * LANE

    total = jnp.float32(0.0)
    count = jnp.float32(0.0)

    if rows > 0:
        pack = max(_sublane_pack(pred.dtype), _sublane_pack(true.dtype))
        n_shards, inner, tile_rows = _plan(rows, pack)
        nblocks = _cdiv(rows, tile_rows)
        needs_mask = (n_shards * inner * tile_rows) != rows

        if n_main == n:
            pred_main = pred_flat.reshape(rows, LANE)     # zero-copy reshape
            true_main = true_flat.reshape(rows, LANE)
        else:
            # TODO(synk): the 128-aligned-prefix slice still costs one copy of the
            # prefix; a fully zero-copy ragged path would need manual DMA from a
            # 1-D HBM ref (memory_space=pl.ANY).
            pred_main = pred_flat[:n_main].reshape(rows, LANE)
            true_main = true_flat[:n_main].reshape(rows, LANE)

        last_block = nblocks - 1

        def in_map(s, j):
            # Clamp so no block ever starts past the slab; the (possibly
            # duplicated) trailing block is fully masked in-kernel.
            return (jnp.minimum(s * inner + j, last_block), 0)

        kernel = functools.partial(
            _acc_metric_kernel, cap=float(cap), rows=rows,
            tile_rows=tile_rows, needs_mask=needs_mask)

        sum_part, cnt_part = pl.pallas_call(
            kernel,
            out_shape=(
                jax.ShapeDtypeStruct((n_shards, SUBLANE, LANE), jnp.float32),
                jax.ShapeDtypeStruct((n_shards, SUBLANE, LANE), jnp.float32),
            ),
            grid_spec=pltpu.PrefetchScalarGridSpec(
                num_scalar_prefetch=0,
                grid=(n_shards, inner),
                in_specs=[
                    pl.BlockSpec((tile_rows, LANE), in_map),
                    pl.BlockSpec((tile_rows, LANE), in_map),
                ],
                out_specs=[
                    pl.BlockSpec((None, SUBLANE, LANE), lambda s, j: (s, 0, 0)),
                    pl.BlockSpec((None, SUBLANE, LANE), lambda s, j: (s, 0, 0)),
                ],
            ),
            compiler_params=pltpu.CompilerParams(
                dimension_semantics=("parallel", "arbitrary"),
                vmem_limit_bytes=VMEM_LIMIT_BYTES,
            ),
        )(pred_main, true_main)

        total = total + jnp.sum(sum_part)
        count = count + jnp.sum(cnt_part)

    if n_main < n:
        # <128-element ragged remainder: tiny jnp epilogue (no jnp.pad anywhere).
        p_tail = pred_flat[n_main:].astype(jnp.float32)
        t_tail = true_flat[n_main:].astype(jnp.float32)
        v_tail = jnp.logical_not(jnp.isnan(t_tail))
        s_tail = jnp.maximum(t_tail, thresh)
        d_tail = jnp.where(v_tail, (t_tail - p_tail) / s_tail, jnp.float32(0.0))
        total = total + jnp.sum(d_tail * d_tail)
        count = count + jnp.sum(v_tail.astype(jnp.float32))

    mean_sq = total / jnp.maximum(count, 1.0)
    metric = (1.0 - jnp.sqrt(mean_sq)) * 100.0
    # TODO(synk): the PyTorch module also prints a warning when there are no
    # valid values; here we only return NaN.
    return jnp.where(count > 0, metric, jnp.float32(jnp.nan))


def _reference(pred, true, cap=200.0):
    pred = jnp.asarray(pred, jnp.float32)
    true = jnp.asarray(true, jnp.float32)
    mask = jnp.logical_not(jnp.isnan(true))
    thresh = 0.2 * cap
    s_i = jnp.where(true >= thresh, true, thresh)
    diff = jnp.where(mask, (true - pred) / s_i, 0.0)
    cnt = jnp.sum(mask.astype(jnp.float32))
    mean_sq = jnp.sum(diff * diff) / jnp.maximum(cnt, 1.0)
    metric = (1.0 - jnp.sqrt(mean_sq)) * 100.0
    return jnp.where(cnt > 0, metric, jnp.nan)


if __name__ == "__main__":
    cap = 200.0

    # Test 1: NCHW-style input; 2048 elems -> zero-copy exact-fit (16, 128) slab.
    k1, k2, k3 = jax.random.split(jax.random.PRNGKey(0), 3)
    shape = (2, 4, 16, 16)
    true = jax.random.uniform(k1, shape, jnp.float32, minval=0.0, maxval=cap)
    pred = true + jax.random.normal(k2, shape, jnp.float32) * 5.0
    true = jnp.where(jax.random.bernoulli(k3, 0.1, shape), jnp.nan, true)

    out = jax.block_until_ready(accuracy_metric_loss(pred, true, cap=cap))
    ref = jax.block_until_ready(_reference(pred, true, cap=cap))
    assert jnp.allclose(out, ref, rtol=1e-5, atol=1e-4), (out, ref)

    # Test 2: ragged input; exercises in-kernel partial-block masking plus the
    # <128-element tail epilogue (no padding anywhere).
    k4, k5, k6 = jax.random.split(jax.random.PRNGKey(1), 3)
    shape2 = (2, 3, 16, 17)   # 1632 elems -> 12 full rows + 96-element tail
    true2 = jax.random.uniform(k4, shape2, jnp.float32, minval=0.0, maxval=cap)
    pred2 = true2 + jax.random.normal(k5, shape2, jnp.float32) * 5.0
    true2 = jnp.where(jax.random.bernoulli(k6, 0.1, shape2), jnp.nan, true2)

    out2 = jax.block_until_ready(accuracy_metric_loss(pred2, true2, cap=cap))
    ref2 = jax.block_until_ready(_reference(pred2, true2, cap=cap))
    assert jnp.allclose(out2, ref2, rtol=1e-5, atol=1e-4), (out2, ref2)

    print("KERNEL_OK")
</pallas_src>

<mosaic_0001>
module attributes {stable_mosaic.version = 11 : i64} {
  func.func @_acc_metric_kernel(%arg0: i32, %arg1: i32, %arg2: memref<8x128xf32, #tpu.memory_space<vmem>>, %arg3: memref<8x128xf32, #tpu.memory_space<vmem>>, %arg4: memref<1x8x128xf32, #tpu.memory_space<vmem>>, %arg5: memref<1x8x128xf32, #tpu.memory_space<vmem>>) attributes {dimension_semantics = [#tpu.dimension_semantics<parallel>, #tpu.dimension_semantics<arbitrary>], iteration_bounds = array<i64: 1, 2>, scalar_prefetch = 0 : i64, scratch_operands = 0 : i64, tpu.core_type = #tpu.core_type<tc>, window_params = [{transform_indices = @transform_0, window_bounds = array<i64: 8, 128>}, {transform_indices = @transform_1, window_bounds = array<i64: 8, 128>}, {transform_indices = @transform_2, window_bounds = array<i64: 1, 8, 128>}, {transform_indices = @transform_3, window_bounds = array<i64: 1, 8, 128>}]} {
    %c0_i32 = arith.constant 0 : i32
    %0 = arith.cmpi eq, %arg1, %c0_i32 : i32
    %1 = arith.extui %0 : i1 to i32
    %c0_i32_0 = arith.constant 0 : i32
    %2 = arith.cmpi ne, %1, %c0_i32_0 : i32
    scf.if %2 {
      %cst_20 = arith.constant 0.000000e+00 : f32
      %32 = vector.broadcast %cst_20 : f32 to vector<8x128xf32>
      %c0_21 = arith.constant 0 : index
      %c0_22 = arith.constant 0 : index
      %c0_23 = arith.constant 0 : index
      %33 = vector.load %arg4[%c0_21, %c0_22, %c0_23] : memref<1x8x128xf32, #tpu.memory_space<vmem>>, vector<1x8x128xf32>
      %34 = vector.shape_cast %33 : vector<1x8x128xf32> to vector<8x128xf32>
      %35 = vector.shape_cast %32 : vector<8x128xf32> to vector<1x8x128xf32>
      tpu.vector_store %arg4[%c0_21, %c0_22, %c0_23], %35 {strides = array<i32>} : memref<1x8x128xf32, #tpu.memory_space<vmem>>, vector<1x8x128xf32>,
      %cst_24 = arith.constant 0.000000e+00 : f32
      %36 = vector.broadcast %cst_24 : f32 to vector<8x128xf32>
      %c0_25 = arith.constant 0 : index
      %c0_26 = arith.constant 0 : index
      %c0_27 = arith.constant 0 : index
      %37 = vector.load %arg5[%c0_25, %c0_26, %c0_27] : memref<1x8x128xf32, #tpu.memory_space<vmem>>, vector<1x8x128xf32>
      %38 = vector.shape_cast %37 : vector<1x8x128xf32> to vector<8x128xf32>
      %39 = vector.shape_cast %36 : vector<8x128xf32> to vector<1x8x128xf32>
      tpu.vector_store %arg5[%c0_25, %c0_26, %c0_27], %39 {strides = array<i32>} : memref<1x8x128xf32, #tpu.memory_space<vmem>>, vector<1x8x128xf32>,
    } else {
    }
    %c0 = arith.constant 0 : index
    %c0_1 = arith.constant 0 : index
    %3 = vector.load %arg3[%c0, %c0_1] : memref<8x128xf32, #tpu.memory_space<vmem>>, vector<8x128xf32>
    %c0_2 = arith.constant 0 : index
    %c0_3 = arith.constant 0 : index
    %4 = vector.load %arg2[%c0_2, %c0_3] : memref<8x128xf32, #tpu.memory_space<vmem>>, vector<8x128xf32>
    %5 = arith.cmpf one, %3, %3 : vector<8x128xf32>
    %cst = arith.constant dense<true> : vector<8x128xi1>
    %6 = arith.xori %5, %cst : vector<8x128xi1>
    %cst_4 = arith.constant 4.000000e+01 : f32
    %7 = vector.broadcast %cst_4 : f32 to vector<8x128xf32>
    %8 = arith.maximumf %3, %7 : vector<8x128xf32>
    %9 = arith.subf %3, %4 : vector<8x128xf32>
    %10 = arith.divf %9, %8 : vector<8x128xf32>
    %11 = arith.mulf %10, %10 : vector<8x128xf32>
    %cst_5 = arith.constant 0.000000e+00 : f32
    %12 = vector.broadcast %cst_5 : f32 to vector<8x128xf32>
    %13 = arith.select %6, %11, %12 : vector<8x128xi1>, vector<8x128xf32>
    %14 = arith.extui %6 : vector<8x128xi1> to vector<8x128xi32>
    %15 = arith.sitofp %14 : vector<8x128xi32> to vector<8x128xf32>
    %c0_6 = arith.constant 0 : index
    %c0_7 = arith.constant 0 : index
    %c0_8 = arith.constant 0 : index
    %16 = vector.load %arg4[%c0_6, %c0_7, %c0_8] : memref<1x8x128xf32, #tpu.memory_space<vmem>>, vector<1x8x128xf32>
    %17 = vector.shape_cast %16 : vector<1x8x128xf32> to vector<8x128xf32>
    %18 = vector.shape_cast %13 : vector<8x128xf32> to vector<1x8x128xf32>
    %cst_9 = arith.constant dense<0.000000e+00> : vector<8x128xf32>
    %19 = vector.multi_reduction <add>, %18, %cst_9 [0] : vector<1x8x128xf32> to vector<8x128xf32>
    %20 = arith.addf %17, %19 : vector<8x128xf32>
    %c0_10 = arith.constant 0 : index
    %c0_11 = arith.constant 0 : index
    %c0_12 = arith.constant 0 : index
    %21 = vector.load %arg4[%c0_10, %c0_11, %c0_12] : memref<1x8x128xf32, #tpu.memory_space<vmem>>, vector<1x8x128xf32>
    %22 = vector.shape_cast %21 : vector<1x8x128xf32> to vector<8x128xf32>
    %23 = vector.shape_cast %20 : vector<8x128xf32> to vector<1x8x128xf32>
    tpu.vector_store %arg4[%c0_10, %c0_11, %c0_12], %23 {strides = array<i32>} : memref<1x8x128xf32, #tpu.memory_space<vmem>>, vector<1x8x128xf32>,
    %c0_13 = arith.constant 0 : index
    %c0_14 = arith.constant 0 : index
    %c0_15 = arith.constant 0 : index
    %24 = vector.load %arg5[%c0_13, %c0_14, %c0_15] : memref<1x8x128xf32, #tpu.memory_space<vmem>>, vector<1x8x128xf32>
    %25 = vector.shape_cast %24 : vector<1x8x128xf32> to vector<8x128xf32>
    %26 = vector.shape_cast %15 : vector<8x128xf32> to vector<1x8x128xf32>
    %cst_16 = arith.constant dense<0.000000e+00> : vector<8x128xf32>
    %27 = vector.multi_reduction <add>, %26, %cst_16 [0] : vector<1x8x128xf32> to vector<8x128xf32>
    %28 = arith.addf %25, %27 : vector<8x128xf32>
    %c0_17 = arith.constant 0 : index
    %c0_18 = arith.constant 0 : index
    %c0_19 = arith.constant 0 : index
    %29 = vector.load %arg5[%c0_17, %c0_18, %c0_19] : memref<1x8x128xf32, #tpu.memory_space<vmem>>, vector<1x8x128xf32>
    %30 = vector.shape_cast %29 : vector<1x8x128xf32> to vector<8x128xf32>
    %31 = vector.shape_cast %28 : vector<8x128xf32> to vector<1x8x128xf32>
    tpu.vector_store %arg5[%c0_17, %c0_18, %c0_19], %31 {strides = array<i32>} : memref<1x8x128xf32, #tpu.memory_space<vmem>>, vector<1x8x128xf32>,
    return
  }
  func.func @transform_0(%arg0: i32, %arg1: i32) -> (i32, i32) {
    %c2_i32 = arith.constant 2 : i32
    %0 = arith.muli %arg0, %c2_i32 : i32
    %1 = arith.addi %0, %arg1 : i32
    %c1_i32 = arith.constant 1 : i32
    %2 = arith.minsi %1, %c1_i32 : i32
    %c0_i32 = arith.constant 0 : i32
    %c0_i32_0 = arith.constant 0 : i32
    return %2, %c0_i32 : i32, i32
  }
  func.func @transform_1(%arg0: i32, %arg1: i32) -> (i32, i32) {
    %c2_i32 = arith.constant 2 : i32
    %0 = arith.muli %arg0, %c2_i32 : i32
    %1 = arith.addi %0, %arg1 : i32
    %c1_i32 = arith.constant 1 : i32
    %2 = arith.minsi %1, %c1_i32 : i32
    %c0_i32 = arith.constant 0 : i32
    %c0_i32_0 = arith.constant 0 : i32
    return %2, %c0_i32 : i32, i32
  }
  func.func @transform_2(%arg0: i32, %arg1: i32) -> (i32, i32, i32) {
    %c0_i32 = arith.constant 0 : i32
    %c0_i32_0 = arith.constant 0 : i32
    %c0_i32_1 = arith.constant 0 : i32
    return %arg0, %c0_i32, %c0_i32_0 : i32, i32, i32
  }
  func.func @transform_3(%arg0: i32, %arg1: i32) -> (i32, i32, i32) {
    %c0_i32 = arith.constant 0 : i32
    %c0_i32_0 = arith.constant 0 : i32
    %c0_i32_1 = arith.constant 0 : i32
    return %arg0, %c0_i32, %c0_i32_0 : i32, i32, i32
  }
}

</mosaic_0001>

<bundles_post_ra>
// kernel: tpu_custom_call.1
= control target key start
LH: loop header
LB: loop body
LE: loop exit
PB: predicated region body
PF: predicated region fallthrough
CT: control target
= control target key end

     0   :  { %9 = vsyncpa [#allocation3], 0  ;;  %s936_s0 = inlined_call_operand.hbm [shape: f32[16,128], index: 0, kind: input, shape index: {}]   ;;  %s937_s1 = inlined_call_operand.hbm [shape: f32[16,128], index: 1, kind: input, shape index: {}]   ;;  %s938_s2 = inlined_call_operand.hbm [shape: f32[1,8,128], index: 2, kind: output, shape index: {0}]   ;;  %s939_s3 = inlined_call_operand.hbm [shape: f32[1,8,128], index: 3, kind: output, shape index: {1}]  }
   0x1   :  { %11 = vsyncpa [#allocation3 + $0x1], 0 }
   0x2   :  { %12 = vsyncpa [#allocation6], 0 }
   0x3   :  { %14 = vsyncpa [#allocation6 + $0x1], 0 }
   0x4   :  { %15 = vsyncpa [#allocation4], 0 }
   0x5   :  { %16 = vsyncpa [#allocation9], 0  ;;  %s709_s12 = smov 0   ;;  %s711_s13 = smov 0  }
   0x6   :  { %s713_s14 = smov 0   ;;  %s715_s15 = smov 0  }
   0x7   :  { %s717_s16 = smov 0   ;;  %s719_s17 = smov 0  }
   0x8 LB: > { %s409_s18 = sadd.s32 4294967295, %s680_s17   ;;  %s31_s19 = sadd.s32 1, %s676_s16  ;;  %s680_s17 = sphi %s719_s17, %s22_s17   ;;  %s676_s16 = sphi %s717_s16, %s955_s16   ;;  %s672_s15 = sphi %s715_s15, %s954_s15   ;;  %s668_s14 = sphi %s713_s14, %s953_s14   ;;  %s664_s13 = sphi %s711_s13, %s952_s13   ;;  %s660_s12 = sphi %s709_s12, %s951_s12  }
   0x9   : > { %p32_p0 = scmp.ge.s32.totalorder %s31_s19, 2  ;;  %p40_p1 = scmp.lt.s32.totalorder %s676_s16, 1 }
   0xa   : > { %s49_s20 = sadd.s32 1, %s668_s14  ;;  %p56_p2 = scmp.ne.s32.totalorder %s668_s14, %s664_s13 }
   0xb   : > { %s957_s19 = smov (%p32_p0, %s31_s19), 0  ;;  %p57_p4 = scmp.eq.s32.totalorder %s680_s17, 0 }
   0xc   : > { %s746_s21 = scalar_select %p40_p1, %s676_s16, 1 }
   0xd   : > { %p44_p3 = scmp.lt.s32.totalorder %s957_s19, 1  ;;  %p62_p5 = scmp.ne.s32.totalorder %s664_s13, %s660_s12 }
   0xe   : > { %p63_p6 = scmp.eq.s32.totalorder %s409_s18, 0  ;;  %p58_p7 = por %p57_p4, %p56_p2 }
   0xf   : > { %s45_s22 = scalar_select %p44_p3, %s957_s19, 1 }
  0x10   : > { %p754_p8 = por %p63_p6, %p62_p5  ;;  %p446_p10 = scmp.lt.s32.totalorder %s680_s17, 2 }
  0x11   : > { %s46_s24 = ssub.s32 %s746_s21, %s45_s22  ;;  %s761_s25 = sand.u32 1, %s668_s14  }
  0x12   : > { %s941_s23 = scalar_select %p754_p8, 1, 0 }
  0x13   : > { %p47_p9 = scmp.eq.s32.totalorder %s46_s24, 0  ;;  %s413_s26 = sshll.u32 %s746_s21, 7 }
  0x14   : > { %s412_s28 = sshll.u32 %s761_s25, 3  ;;  %s773_s4 = scalar_lea.hbm %s936_s0, %s413_s26 }
  0x15   : > { %s765_s27 = scalar_select %p47_p9, %s668_s14, %s49_s20  }
  0x16   : > { %s176_s5 = scalar_lea.vmem [#allocation2], %s412_s28  ;;  %p777_p11 = pnand %p446_p10, %p58_p7 }
  0x17   : > { %s187_s6 = sshll.u32 %s176_s5, 4  ;;  %s173_s8 = scalar_lea.sflag [#allocation3], %s761_s25  ;;  %s781_s6 = int_to_ptr.vmem [resolvable:$true] %s187_s6 }
  0x18   : > { %s506_s9 = scalar_lea.hbm %s773_s4, 128  ;;  %p508_p1 = pneg %p777_p11 }
  0x19   : > { %p507_p0 = scmp.ne.s32.totalorder %s773_s4, %s506_s9  ;;  %s511_s12 = scalar_lea.hbm %s936_s0, 256 }
  0x1a   : > { %p512_p4 = scmp.lt.u32.totalorder %s773_s4, %s936_s0  ;;  %p513_p5 = scmp.lt.u32.totalorder %s511_s12, %s506_s9 }
  0x1b   : > { %p509_p2 = pnand %p508_p1, %p507_p0  ;;  %p515_p7 = scmp.lt.u32.totalorder %s506_s9, %s773_s4 }
  0x1c   : > { %p514_p6 = por %p513_p5, %p512_p4 }
  0x1d   : > { %p510_p3 = pneg %p509_p2 }
  0x1e   : > { %p516_p9 = por %p515_p7, %p514_p6 }
  0x20   : > { %p517_p10 = pnand %p516_p9, %p510_p3 }
  0x22   : > { %520 = shalt.err (!%p517_p10)
}
  0x23   : > { %s521_s24 = scalar_lea.vmem %s781_s6, 128  ;;  %s682_s29 = smov [#allocation2]  }
  0x24   : > { %p522_p0 = scmp.ne.s32.totalorder %s781_s6, %s521_s24  ;;  %s526_s30 = sshll.u32 %s682_s29, 4  ;;  %s527_s30 = int_to_ptr.vmem [resolvable:$false] %s526_s30 }
  0x25   : > { %s528_s5 = scalar_lea.vmem %s527_s30, 256  ;;  %p529_p13 = scmp.lt.s32.totalorder %s781_s6, %s527_s30 }
  0x26   : > { %p524_p2 = pnand %p522_p0, %p508_p1  ;;  %p530_p4 = scmp.lt.s32.totalorder %s528_s5, %s521_s24 }
  0x28   : > { %p525_p12 = pneg %p524_p2  ;;  %p531_p5 = por %p530_p4, %p529_p13 }
  0x2a   : > { %p532_p6 = pnand %p531_p5, %p525_p12 }
  0x2c   : > { %535 = shalt.err (!%p532_p6)
}
  0x2d   : > { %442 = dma.hbm_to_vmem [thread:$0]  (!%p777_p11), %s773_s4, 128, %s781_s6, %s173_s8  }
  0x2e   : > { %p943_p3 = scmp.lt.s32.totalorder %s680_s17, 3  ;;  %p944_p7 = scmp.ge.s32.totalorder %s680_s17, 1 }
  0x2f   : > { %s824_s12 = scalar_lea.hbm %s937_s1, %s413_s26  ;;  %s198_s20 = scalar_lea.vmem [#allocation5], %s412_s28 }
  0x30   : > { %p815_p9 = pnand %p944_p7, %p943_p3  ;;  %s209_s22 = sshll.u32 %s198_s20, 4  ;;  %s210_s22 = int_to_ptr.vmem [resolvable:$true] %s209_s22 }
  0x31   : > { %s195_s4 = scalar_lea.sflag [#allocation6], %s761_s25  ;;  %s536_s6 = scalar_lea.hbm %s824_s12, 128 }
  0x32   : > { %s945_s9 = scalar_select %p815_p9, 1, 0 }
  0x33   : > { %p537_p12 = scmp.ne.s32.totalorder %s824_s12, %s536_s6  ;;  %s541_s26 = scalar_lea.hbm %s937_s1, 256 }
  0x34   : > { %p542_p0 = scmp.lt.u32.totalorder %s824_s12, %s937_s1  ;;  %p543_p2 = scmp.lt.u32.totalorder %s541_s26, %s536_s6 }
  0x35   : > { %p539_p13 = pnand %p537_p12, %p508_p1  ;;  %p545_p5 = scmp.lt.u32.totalorder %s536_s6, %s824_s12 }
  0x36   : > { %p544_p4 = por %p543_p2, %p542_p0 }
  0x37   : > { %p540_p10 = pneg %p539_p13 }
  0x38   : > { %p546_p6 = por %p545_p5, %p544_p4 }
  0x3a   : > { %p547_p3 = pnand %p546_p6, %p540_p10 }
  0x3c   : > { %550 = shalt.err (!%p547_p3)
}
  0x3d   : > { %s551_s25 = scalar_lea.vmem %s210_s22, 128  ;;  %s683_s28 = smov [#allocation5]  }
  0x3e   : > { %p552_p7 = scmp.ne.s32.totalorder %s210_s22, %s551_s25  ;;  %s556_s30 = sshll.u32 %s683_s28, 4  ;;  %s557_s30 = int_to_ptr.vmem [resolvable:$false] %s556_s30 }
  0x3f   : > { %s558_s5 = scalar_lea.vmem %s557_s30, 256  ;;  %p559_p8 = scmp.lt.s32.totalorder %s210_s22, %s557_s30 }
  0x40   : > { %p554_p12 = pnand %p552_p7, %p508_p1  ;;  %p560_p9 = scmp.lt.s32.totalorder %s558_s5, %s551_s25 }
  0x42   : > { %p555_p13 = pneg %p554_p12  ;;  %p561_p0 = por %p560_p9, %p559_p8 }
  0x44   : > { %p562_p2 = pnand %p561_p0, %p555_p13 }
  0x46   : > { %565 = shalt.err (!%p562_p2)
}
  0x47   : > { %445 = dma.hbm_to_vmem [thread:$0]  (!%p777_p11), %s824_s12, 128, %s210_s22, %s195_s4  }
  0x48   : > { %p946_p10 = scmp.ne.s32.totalorder %s945_s9, 0 }
  0x49   : > { %s220_s10 = sand.u32 (!%p946_p10), 1, %s664_s13   ;;  %p947_p1 = scmp.ne.s32.totalorder (!%p946_p10), %s941_s23, 0 }
  0x4a   : > { %218 = sbr.rel (%p946_p10) target bundleno = 143 (0x8f), region = 28  ;;  %s417_s11 = sshll.u32 (!%p946_p10), %s220_s10, 3 }
  0x4b   : > { %s221_s20 = scalar_lea.sflag (!%p946_p10), [#allocation3], %s220_s10  ;;  %s224_s6 = scalar_lea.vmem (!%p946_p10), [#allocation2], %s417_s11 }
  0x51   : > { %643 = dma.done.wait (%p947_p1), %s221_s20, 128  }
  0x52   : > { %645 = vsyncadd (%p947_p1), %s221_s20, 4294967168  ;;  %s230_s21 = scalar_lea.sflag [#allocation6], %s220_s10  ;;  %s233_s8 = scalar_lea.vmem [#allocation5], %s417_s11 }
  0x53   : > { %647 = dma.done.wait (%p947_p1), %s230_s21, 128  }
  0x54   : > { %649 = vsyncadd (%p947_p1), %s230_s21, 4294967168  ;;  %p419_p8 = scmp.ne.s32.totalorder %s672_s15, 0 }
  0x55   : > { %v684_v0 = vmov (!%p419_p8), 0.0  }
  0x56   : > { %267 = sbr.rel (%p419_p8) target bundleno = 93 (0x5d), region = 40  ;;  %268 = vst [vmem:[#allocation7] sm:$0xff] (!%p419_p8), %v684_v0  ;;  %269 = vst [vmem:[#allocation8] sm:$0xff] (!%p419_p8), %v684_v0 }
  0x5d PF: > { %v270_v1 = vld [vmem:[%s233_s8] sm:$0xff]  ;;  %v286_v3 = vld [vmem:[#allocation8] sm:$0xff]  ;;  %vm685_vm1 = vmmov 1   ;;  %v686_v5 = vmov 0.0   ;;  %p868_p11 = scmp.eq.s32.totalorder %s409_s18, 1  ;;  %s687_s23 = smov [#allocation8]  }
  0x5e   : > { %vm272_vm0 = vcmp.ne.f32.partialorder %v270_v1, %v270_v1  ;;  %v274_v2 = vmax.f32 %v270_v1, 40.0  ;;  %s312_s7 = sshll.u32 %s687_s23, 4  ;;  %v271_v8 = vld [vmem:[%s224_s6] sm:$0xff]  ;;  %s313_s7 = int_to_ptr.vmem [resolvable:$true] %s312_s7 }
  0x5f   : > { %vm860_vm2 = vmxor %vm272_vm0, %vm685_vm1  ;;  %s566_s9 = scalar_lea.vmem %s313_s7, 128  ;;  %p573_p6 = scmp.lt.s32.totalorder %s313_s7, %s313_s7 }
  0x60   : > { %504 = vrcp.f32 %v274_v2  ;;  %v420_v6 = vsel %vm860_vm2, 1.0, %v686_v5  ;;  %p567_p9 = scmp.ne.s32.totalorder %s313_s7, %s566_s9  ;;  %p574_p3 = scmp.lt.s32.totalorder %s566_s9, %s566_s9 }
  0x61   : > { %v288_v7 = vadd.f32 %v420_v6, %v286_v3 }
  0x62   : > { %p568_p4 = pnand %p567_p9, %p868_p11  ;;  %p575_p7 = por %p574_p3, %p573_p6 }
  0x63   : > { %289 = vst [vmem:[#allocation8] sm:$0xff] %v288_v7 }
  0x64   : > { %p569_p5 = pneg %p568_p4 }
  0x66   : > { %p576_p12 = pnand %p575_p7, %p569_p5 }
  0x68   : > { %579 = shalt.err (!%p576_p12)
}
  0x69   : > { %s580_s22 = scalar_lea.hbm %s939_s3, 128 }
  0x6a   : > { %p581_p13 = scmp.ne.s32.totalorder %s939_s3, %s580_s22  ;;  %p586_p10 = scmp.lt.u32.totalorder %s580_s22, %s939_s3 }
  0x6c   : > { %p582_p0 = pnand %p581_p13, %p868_p11 }
  0x6e   : > { %p583_p2 = pneg %p582_p0 }
  0x70   : > { %p588_p1 = pnand %p586_p10, %p583_p2 }
  0x72   : > { %591 = shalt.err (!%p588_p1)
}
  0x73   : > { %434 = dma.vmem_to_hbm [thread:$0]  (%p868_p11), %s313_s7, 128, %s939_s3, [#allocation9]   ;;  %v275_v9 = vsub.f32 %v270_v1, %v271_v8  ;;  %v505_v10 = vpop.eup %504  ;;  %v282_v13 = vld [vmem:[#allocation7] sm:$0xff] }
  0x74   : > { %s688_s30 = smov [#allocation7]  }
  0x75   : > { %v277_v11 = vmul.f32 %v505_v10, %v275_v9  ;;  %s299_s5 = sshll.u32 %s688_s30, 4  ;;  %s300_s5 = int_to_ptr.vmem [resolvable:$true] %s299_s5 }
  0x76   : > { %s592_s10 = scalar_lea.vmem %s300_s5, 128  ;;  %p599_p5 = scmp.lt.s32.totalorder %s300_s5, %s300_s5 }
  0x77   : > { %v278_v12 = vmul.f32 %v277_v11, %v277_v11  ;;  %p593_p8 = scmp.ne.s32.totalorder %s300_s5, %s592_s10  ;;  %p600_p6 = scmp.lt.s32.totalorder %s592_s10, %s592_s10 }
  0x79   : > { %v279_v14 = vsel %vm860_vm2, %v278_v12, 0.0  ;;  %p594_p9 = pnand %p593_p8, %p868_p11  ;;  %p601_p3 = por %p600_p6, %p599_p5 }
  0x7a   : > { %v284_v15 = vadd.f32 %v282_v13, %v279_v14 }
  0x7b   : > { %p595_p4 = pneg %p594_p9 }
  0x7c   : > { %285 = vst [vmem:[#allocation7] sm:$0xff] %v284_v15 }
  0x7d   : > { %p602_p7 = pnand %p601_p3, %p595_p4 }
  0x7f   : > { %605 = shalt.err (!%p602_p7)
}
  0x80   : > { %s606_s6 = scalar_lea.hbm %s938_s2, 128 }
  0x81   : > { %p607_p12 = scmp.ne.s32.totalorder %s938_s2, %s606_s6  ;;  %p612_p2 = scmp.lt.u32.totalorder %s606_s6, %s938_s2 }
  0x83   : > { %p608_p13 = pnand %p607_p12, %p868_p11 }
  0x85   : > { %p609_p0 = pneg %p608_p13 }
  0x87   : > { %p614_p10 = pnand %p612_p2, %p609_p0 }
  0x89   : > { %617 = shalt.err (!%p614_p10)
}
  0x8a   : > { %432 = dma.vmem_to_hbm [thread:$0]  (%p868_p11), %s300_s5, 128, %s938_s2, [#allocation4]  }
  0x8b   : > { %651 = dma.done.wait (%p868_p11), [#allocation4], 128  }
  0x8c   : > { %653 = vsyncadd (%p868_p11), [#allocation4], 4294967168 }
  0x8d   : > { %655 = dma.done.wait (%p868_p11), [#allocation9], 128  }
  0x8e   : > { %657 = vsyncadd (%p868_p11), [#allocation9], 4294967168 }
  0x8f PF: > { %s22_s17 = sadd.s32 1, %s680_s17   ;;  %s951_s12 = smov %s664_s13 }
  0x90   : > { %p19_p1 = scmp.ge.s32.totalorder %s22_s17, 4   ;;  %s952_s13 = smov %s668_s14 }
  0x91   : > { %s953_s14 = smov %s765_s27  ;;  %s954_s15 = smov %s676_s16 }
  0x92   : > { %s955_s16 = smov %s957_s19  ;;  %21 = sbr.rel (!%p19_p1) target bundleno = 8 (0x8), region = 92 }
  0x99   :  { %329 = vsyncpa [#allocation3], 1 }
  0x9a   :  { %331 = vsyncpa [#allocation3 + $0x1], 1 }
  0x9b   :  { %332 = vsyncpa [#allocation6], 1 }
  0x9c   :  { %334 = vsyncpa [#allocation6 + $0x1], 1 }
  0x9d   :  { %335 = vsyncpa [#allocation4], 1 }
  0x9e   :  { %337 = vsyncpa [#allocation4 + $0x1], 1 }
  0x9f   :  { %338 = vsyncpa [#allocation9], 1 }

</bundles_post_ra>
